<compile_context>
chip_gen: v7x
topology: tpu7x:2x2x1
jax: 0.10.0
libtpu: 0.0.40
codegen_flags: <defaults>
</compile_context>

<pallas_src>
import functools

import jax
import jax.numpy as jnp
from jax import lax
from jax.experimental import pallas as pl
from jax.experimental.pallas import tpu as pltpu

_LANE = 128
_SUBLANE = 8


def _auto_exp_pool_kernel(alpha_ref, logits_ref, decision_ref, out_ref,
                          m_ref, num_ref, den_ref,
                          *, seq_len, block_t, mask_t):
    # alpha_ref:    (1, 1, C)
    # logits_ref:   (TB, TT, C)   current (batch-tile, T-tile)
    # decision_ref: (TB, TT, C)
    # out_ref:      (TB, 1, C)
    # m_ref/num_ref/den_ref: (TB, 1, C) f32 scratch (running max / numerator /
    #                         denominator), resident across the T grid axis.
    t = pl.program_id(1)
    nt = pl.num_programs(1)

    @pl.when(t == 0)
    def _init():
        m_ref[...] = jnp.full(m_ref.shape, -jnp.inf, dtype=jnp.float32)
        num_ref[...] = jnp.zeros(num_ref.shape, dtype=jnp.float32)
        den_ref[...] = jnp.zeros(den_ref.shape, dtype=jnp.float32)

    alpha = alpha_ref[...].astype(jnp.float32)          # (1, 1, C)
    logits = logits_ref[...].astype(jnp.float32)        # (TB, TT, C)
    decision = decision_ref[...].astype(jnp.float32)    # (TB, TT, C)

    scaled = alpha * decision                            # (TB, TT, C)

    if mask_t:
        # Last T tile is partial: neutralize out-of-range rows.
        t_idx = lax.broadcasted_iota(jnp.int32, scaled.shape, 1) + t * block_t
        valid = t_idx < seq_len
        scaled = jnp.where(valid, scaled, -jnp.inf)      # -> exp() == 0
        logits = jnp.where(valid, logits, 0.0)

    # Online max-rescaled accumulation (numerically safe exp).
    m_blk = jnp.max(scaled, axis=1, keepdims=True)       # (TB, 1, C)
    m_new = jnp.maximum(m_ref[...], m_blk)
    corr = jnp.exp(m_ref[...] - m_new)                   # exp(-inf)=0 on first tile
    w = jnp.exp(scaled - m_new)                          # (TB, TT, C)

    num_ref[...] = corr * num_ref[...] + jnp.sum(logits * w, axis=1, keepdims=True)
    den_ref[...] = corr * den_ref[...] + jnp.sum(w, axis=1, keepdims=True)
    m_ref[...] = m_new

    @pl.when(t == nt - 1)
    def _finalize():
        inv_den = pl.reciprocal(den_ref[...], approx=True)   # EUP slot, ~free
        out_ref[...] = (num_ref[...] * inv_den).astype(out_ref.dtype)


def _choose_tiles(B, T, C, itemsize,
                  per_block_bytes=4 * 1024 * 1024,
                  max_block_b=256, max_block_t=512):
    """Pick (TB, TT) so 2 inputs x 2 buffers x block fits the scoped VMEM budget.

    Accounts for VMEM lane/sublane padding (C pads to 128 lanes, TT to 8
    sublanes). Sized against a 32 MiB scoped limit -> safe on v7x (64 MiB
    physical) as well as v5e/v6e.
    """
    c_pad = max(_LANE, ((C + _LANE - 1) // _LANE) * _LANE)
    block_t = T if T <= max_block_t else max_block_t            # multiple of 8
    t_pad = ((block_t + _SUBLANE - 1) // _SUBLANE) * _SUBLANE
    row_bytes = t_pad * c_pad * itemsize                        # per batch row, padded
    block_b = max(1, per_block_bytes // row_bytes)
    block_b = min(block_b, B, max_block_b)
    if B > 1:
        # Keep >= 2 steps on the parallel batch axis so both v7x TensorCores work.
        block_b = min(block_b, pl.cdiv(B, 2))
    return int(block_b), int(block_t)


def auto_exp_pool(alpha, logits, decision, *, block_b=None, block_t=None,
                  vmem_limit_bytes=32 * 1024 * 1024):
    """alpha: (C,), logits/decision: (B, T, C) -> (B, C) in logits.dtype."""
    B, T, C = logits.shape
    assert decision.shape == (B, T, C)
    assert alpha.shape == (C,)

    itemsize = jnp.dtype(logits.dtype).itemsize
    auto_tb, auto_tt = _choose_tiles(B, T, C, itemsize)
    TB = min(B, block_b) if block_b is not None else auto_tb
    TT = block_t if block_t is not None else auto_tt
    assert TT == T or TT % _SUBLANE == 0, "block_t must equal T or be a multiple of 8"

    n_b = pl.cdiv(B, TB)
    n_t = pl.cdiv(T, TT)
    mask_t = (T % TT) != 0

    alpha3 = alpha.reshape(1, 1, C).astype(jnp.float32)
    kernel = functools.partial(_auto_exp_pool_kernel,
                               seq_len=T, block_t=TT, mask_t=mask_t)

    out3 = pl.pallas_call(
        kernel,
        out_shape=jax.ShapeDtypeStruct((B, 1, C), logits.dtype),
        grid_spec=pltpu.PrefetchScalarGridSpec(
            num_scalar_prefetch=0,
            grid=(n_b, n_t),
            in_specs=[
                pl.BlockSpec((1, 1, C), lambda b, t: (0, 0, 0)),     # alpha (shared)
                pl.BlockSpec((TB, TT, C), lambda b, t: (b, t, 0)),   # logits
                pl.BlockSpec((TB, TT, C), lambda b, t: (b, t, 0)),   # decision
            ],
            out_specs=pl.BlockSpec((TB, 1, C), lambda b, t: (b, 0, 0)),
            scratch_shapes=[
                pltpu.VMEM((TB, 1, C), jnp.float32),   # running max
                pltpu.VMEM((TB, 1, C), jnp.float32),   # numerator
                pltpu.VMEM((TB, 1, C), jnp.float32),   # denominator
            ],
        ),
        compiler_params=pltpu.CompilerParams(
            dimension_semantics=("parallel", "arbitrary"),
            vmem_limit_bytes=vmem_limit_bytes,
        ),
    )(alpha3, logits, decision)
    return out3.reshape(B, C)


def auto_exp_pool_ref(alpha, logits, decision):
    scaled = (alpha * decision).astype(jnp.float32)
    w = jnp.exp(scaled)
    lg = logits.astype(jnp.float32)
    return ((lg * w).sum(axis=1) / w.sum(axis=1)).astype(logits.dtype)


if __name__ == "__main__":
    outputdim = 10   # C
    B, T = 2, 8      # batch, pooled (sequence) length

    # Deterministic parameter init matching torch.full((outputdim,), 1).
    alpha = jnp.ones((outputdim,), dtype=jnp.float32)

    key = jax.random.PRNGKey(0)
    k1, k2, k3, k4 = jax.random.split(key, 4)
    logits = jax.random.uniform(k1, (B, T, outputdim), dtype=jnp.float32)
    decision = jax.random.uniform(k2, (B, T, outputdim), dtype=jnp.float32)

    out = jax.block_until_ready(auto_exp_pool(alpha, logits, decision))
    ref = auto_exp_pool_ref(alpha, logits, decision)
    assert out.shape == (B, outputdim)
    assert jnp.allclose(out, ref, atol=2e-3, rtol=2e-3), "mismatch vs reference"

    # Second (still small) config: exercises the multi-step T reduction with
    # the online max, the partial T tile masking, and a partial batch block.
    B2, T2 = 3, 40
    alpha2 = jnp.linspace(0.5, 2.0, outputdim, dtype=jnp.float32)
    logits2 = jax.random.uniform(k3, (B2, T2, outputdim), dtype=jnp.float32) * 4.0 - 2.0
    decision2 = jax.random.uniform(k4, (B2, T2, outputdim), dtype=jnp.float32)
    out2 = jax.block_until_ready(
        auto_exp_pool(alpha2, logits2, decision2, block_b=2, block_t=16))
    ref2 = auto_exp_pool_ref(alpha2, logits2, decision2)
    assert out2.shape == (B2, outputdim)
    assert jnp.allclose(out2, ref2, atol=2e-3, rtol=2e-3), "mismatch vs reference (tiled)"

    print("KERNEL_OK")
</pallas_src>

<mosaic_0001>
module attributes {stable_mosaic.version = 11 : i64} {
  func.func @_auto_exp_pool_kernel(%arg0: i32, %arg1: i32, %arg2: memref<1x1x10xf32, #tpu.memory_space<vmem>>, %arg3: memref<1x8x10xf32, #tpu.memory_space<vmem>>, %arg4: memref<1x8x10xf32, #tpu.memory_space<vmem>>, %arg5: memref<1x1x10xf32, #tpu.memory_space<vmem>>, %arg6: memref<1x1x10xf32, #tpu.memory_space<vmem>>, %arg7: memref<1x1x10xf32, #tpu.memory_space<vmem>>, %arg8: memref<1x1x10xf32, #tpu.memory_space<vmem>>) attributes {dimension_semantics = [#tpu.dimension_semantics<parallel>, #tpu.dimension_semantics<arbitrary>], iteration_bounds = array<i64: 2, 1>, scalar_prefetch = 0 : i64, scratch_operands = 3 : i64, tpu.core_type = #tpu.core_type<tc>, window_params = [{pipeline_mode = #tpu.pipeline_mode<synchronous>, transform_indices = @transform_0, window_bounds = array<i64: 1, 1, 10>}, {transform_indices = @transform_1, window_bounds = array<i64: 1, 8, 10>}, {transform_indices = @transform_2, window_bounds = array<i64: 1, 8, 10>}, {transform_indices = @transform_3, window_bounds = array<i64: 1, 1, 10>}]} {
    %c0_i32 = arith.constant 0 : i32
    %0 = arith.cmpi eq, %arg1, %c0_i32 : i32
    %1 = arith.extui %0 : i1 to i32
    %c0_i32_0 = arith.constant 0 : i32
    %2 = arith.cmpi ne, %1, %c0_i32_0 : i32
    scf.if %2 {
      %cst_34 = arith.constant 0xFF800000 : f32
      %35 = vector.broadcast %cst_34 : f32 to vector<1x1x10xf32>
      %c0_35 = arith.constant 0 : index
      %c0_36 = arith.constant 0 : index
      %c0_37 = arith.constant 0 : index
      %36 = vector.load %arg6[%c0_35, %c0_36, %c0_37] : memref<1x1x10xf32, #tpu.memory_space<vmem>>, vector<1x1x10xf32>
      tpu.vector_store %arg6[%c0_35, %c0_36, %c0_37], %35 {strides = array<i32>} : memref<1x1x10xf32, #tpu.memory_space<vmem>>, vector<1x1x10xf32>,
      %cst_38 = arith.constant 0.000000e+00 : f32
      %37 = vector.broadcast %cst_38 : f32 to vector<1x1x10xf32>
      %c0_39 = arith.constant 0 : index
      %c0_40 = arith.constant 0 : index
      %c0_41 = arith.constant 0 : index
      %38 = vector.load %arg7[%c0_39, %c0_40, %c0_41] : memref<1x1x10xf32, #tpu.memory_space<vmem>>, vector<1x1x10xf32>
      tpu.vector_store %arg7[%c0_39, %c0_40, %c0_41], %37 {strides = array<i32>} : memref<1x1x10xf32, #tpu.memory_space<vmem>>, vector<1x1x10xf32>,
      %cst_42 = arith.constant 0.000000e+00 : f32
      %39 = vector.broadcast %cst_42 : f32 to vector<1x1x10xf32>
      %c0_43 = arith.constant 0 : index
      %c0_44 = arith.constant 0 : index
      %c0_45 = arith.constant 0 : index
      %40 = vector.load %arg8[%c0_43, %c0_44, %c0_45] : memref<1x1x10xf32, #tpu.memory_space<vmem>>, vector<1x1x10xf32>
      tpu.vector_store %arg8[%c0_43, %c0_44, %c0_45], %39 {strides = array<i32>} : memref<1x1x10xf32, #tpu.memory_space<vmem>>, vector<1x1x10xf32>,
    } else {
    }
    %c0 = arith.constant 0 : index
    %c0_1 = arith.constant 0 : index
    %c0_2 = arith.constant 0 : index
    %3 = vector.load %arg2[%c0, %c0_1, %c0_2] : memref<1x1x10xf32, #tpu.memory_space<vmem>>, vector<1x1x10xf32>
    %c0_3 = arith.constant 0 : index
    %c0_4 = arith.constant 0 : index
    %c0_5 = arith.constant 0 : index
    %4 = vector.load %arg3[%c0_3, %c0_4, %c0_5] : memref<1x8x10xf32, #tpu.memory_space<vmem>>, vector<1x8x10xf32>
    %c0_6 = arith.constant 0 : index
    %c0_7 = arith.constant 0 : index
    %c0_8 = arith.constant 0 : index
    %5 = vector.load %arg4[%c0_6, %c0_7, %c0_8] : memref<1x8x10xf32, #tpu.memory_space<vmem>>, vector<1x8x10xf32>
    %6 = vector.broadcast %3 : vector<1x1x10xf32> to vector<1x8x10xf32>
    %7 = arith.mulf %6, %5 : vector<1x8x10xf32>
    %cst = arith.constant dense<0xFF800000> : vector<1x10xf32>
    %8 = vector.multi_reduction <maximumf>, %7, %cst [1] : vector<1x8x10xf32> to vector<1x10xf32>
    %9 = vector.shape_cast %8 : vector<1x10xf32> to vector<1x1x10xf32>
    %c0_9 = arith.constant 0 : index
    %c0_10 = arith.constant 0 : index
    %c0_11 = arith.constant 0 : index
    %10 = vector.load %arg6[%c0_9, %c0_10, %c0_11] : memref<1x1x10xf32, #tpu.memory_space<vmem>>, vector<1x1x10xf32>
    %11 = arith.maximumf %10, %9 : vector<1x1x10xf32>
    %c0_12 = arith.constant 0 : index
    %c0_13 = arith.constant 0 : index
    %c0_14 = arith.constant 0 : index
    %12 = vector.load %arg6[%c0_12, %c0_13, %c0_14] : memref<1x1x10xf32, #tpu.memory_space<vmem>>, vector<1x1x10xf32>
    %13 = arith.subf %12, %11 : vector<1x1x10xf32>
    %14 = math.exp %13 : vector<1x1x10xf32>
    %15 = vector.broadcast %11 : vector<1x1x10xf32> to vector<1x8x10xf32>
    %16 = arith.subf %7, %15 : vector<1x8x10xf32>
    %17 = math.exp %16 : vector<1x8x10xf32>
    %c0_15 = arith.constant 0 : index
    %c0_16 = arith.constant 0 : index
    %c0_17 = arith.constant 0 : index
    %18 = vector.load %arg7[%c0_15, %c0_16, %c0_17] : memref<1x1x10xf32, #tpu.memory_space<vmem>>, vector<1x1x10xf32>
    %19 = arith.mulf %14, %18 : vector<1x1x10xf32>
    %20 = arith.mulf %4, %17 : vector<1x8x10xf32>
    %cst_18 = arith.constant dense<0.000000e+00> : vector<1x10xf32>
    %21 = vector.multi_reduction <add>, %20, %cst_18 [1] : vector<1x8x10xf32> to vector<1x10xf32>
    %22 = vector.shape_cast %21 : vector<1x10xf32> to vector<1x1x10xf32>
    %23 = arith.addf %19, %22 : vector<1x1x10xf32>
    %c0_19 = arith.constant 0 : index
    %c0_20 = arith.constant 0 : index
    %c0_21 = arith.constant 0 : index
    %24 = vector.load %arg7[%c0_19, %c0_20, %c0_21] : memref<1x1x10xf32, #tpu.memory_space<vmem>>, vector<1x1x10xf32>
    tpu.vector_store %arg7[%c0_19, %c0_20, %c0_21], %23 {strides = array<i32>} : memref<1x1x10xf32, #tpu.memory_space<vmem>>, vector<1x1x10xf32>,
    %c0_22 = arith.constant 0 : index
    %c0_23 = arith.constant 0 : index
    %c0_24 = arith.constant 0 : index
    %25 = vector.load %arg8[%c0_22, %c0_23, %c0_24] : memref<1x1x10xf32, #tpu.memory_space<vmem>>, vector<1x1x10xf32>
    %26 = arith.mulf %14, %25 : vector<1x1x10xf32>
    %cst_25 = arith.constant dense<0.000000e+00> : vector<1x10xf32>
    %27 = vector.multi_reduction <add>, %17, %cst_25 [1] : vector<1x8x10xf32> to vector<1x10xf32>
    %28 = vector.shape_cast %27 : vector<1x10xf32> to vector<1x1x10xf32>
    %29 = arith.addf %26, %28 : vector<1x1x10xf32>
    %c0_26 = arith.constant 0 : index
    %c0_27 = arith.constant 0 : index
    %c0_28 = arith.constant 0 : index
    %30 = vector.load %arg8[%c0_26, %c0_27, %c0_28] : memref<1x1x10xf32, #tpu.memory_space<vmem>>, vector<1x1x10xf32>
    tpu.vector_store %arg8[%c0_26, %c0_27, %c0_28], %29 {strides = array<i32>} : memref<1x1x10xf32, #tpu.memory_space<vmem>>, vector<1x1x10xf32>,
    %c0_29 = arith.constant 0 : index
    %c0_30 = arith.constant 0 : index
    %c0_31 = arith.constant 0 : index
    %31 = vector.load %arg6[%c0_29, %c0_30, %c0_31] : memref<1x1x10xf32, #tpu.memory_space<vmem>>, vector<1x1x10xf32>
    tpu.vector_store %arg6[%c0_29, %c0_30, %c0_31], %11 {strides = array<i32>} : memref<1x1x10xf32, #tpu.memory_space<vmem>>, vector<1x1x10xf32>,
    %c0_i32_32 = arith.constant 0 : i32
    %32 = arith.cmpi eq, %arg1, %c0_i32_32 : i32
    %33 = arith.extui %32 : i1 to i32
    %c0_i32_33 = arith.constant 0 : i32
    %34 = arith.cmpi ne, %33, %c0_i32_33 : i32
    scf.if %34 {
      %c0_34 = arith.constant 0 : index
      %c0_35 = arith.constant 0 : index
      %c0_36 = arith.constant 0 : index
      %35 = vector.load %arg8[%c0_34, %c0_35, %c0_36] : memref<1x1x10xf32, #tpu.memory_space<vmem>>, vector<1x1x10xf32>
      %36 = tpu.reciprocal %35 {approx = true} : vector<1x1x10xf32> -> vector<1x1x10xf32>
      %c0_37 = arith.constant 0 : index
      %c0_38 = arith.constant 0 : index
      %c0_39 = arith.constant 0 : index
      %37 = vector.load %arg7[%c0_37, %c0_38, %c0_39] : memref<1x1x10xf32, #tpu.memory_space<vmem>>, vector<1x1x10xf32>
      %38 = arith.mulf %37, %36 : vector<1x1x10xf32>
      %c0_40 = arith.constant 0 : index
      %c0_41 = arith.constant 0 : index
      %c0_42 = arith.constant 0 : index
      %39 = vector.load %arg5[%c0_40, %c0_41, %c0_42] : memref<1x1x10xf32, #tpu.memory_space<vmem>>, vector<1x1x10xf32>
      tpu.vector_store %arg5[%c0_40, %c0_41, %c0_42], %38 {strides = array<i32>} : memref<1x1x10xf32, #tpu.memory_space<vmem>>, vector<1x1x10xf32>,
    } else {
    }
    return
  }
  func.func @transform_0(%arg0: i32, %arg1: i32) -> (i32, i32, i32) {
    %c0_i32 = arith.constant 0 : i32
    %c0_i32_0 = arith.constant 0 : i32
    %c0_i32_1 = arith.constant 0 : i32
    %c0_i32_2 = arith.constant 0 : i32
    return %c0_i32, %c0_i32_0, %c0_i32_1 : i32, i32, i32
  }
  func.func @transform_1(%arg0: i32, %arg1: i32) -> (i32, i32, i32) {
    %c0_i32 = arith.constant 0 : i32
    %c0_i32_0 = arith.constant 0 : i32
    return %arg0, %arg1, %c0_i32 : i32, i32, i32
  }
  func.func @transform_2(%arg0: i32, %arg1: i32) -> (i32, i32, i32) {
    %c0_i32 = arith.constant 0 : i32
    %c0_i32_0 = arith.constant 0 : i32
    return %arg0, %arg1, %c0_i32 : i32, i32, i32
  }
  func.func @transform_3(%arg0: i32, %arg1: i32) -> (i32, i32, i32) {
    %c0_i32 = arith.constant 0 : i32
    %c0_i32_0 = arith.constant 0 : i32
    %c0_i32_1 = arith.constant 0 : i32
    return %arg0, %c0_i32, %c0_i32_0 : i32, i32, i32
  }
}

</mosaic_0001>

<bundles_post_ra>
// kernel: tpu_custom_call.1
= control target key start
LH: loop header
LB: loop body
LE: loop exit
PB: predicated region body
PF: predicated region fallthrough
CT: control target
= control target key end

     0   :  { %8 = vsyncpa [#allocation6], 0  ;;  %s1014_s0 = inlined_call_operand.hbm [shape: f32[1,1,10], index: 0, kind: input, shape index: {}]   ;;  %s1015_s1 = inlined_call_operand.hbm [shape: f32[2,8,10], index: 1, kind: input, shape index: {}]   ;;  %s1016_s2 = inlined_call_operand.hbm [shape: f32[2,8,10], index: 2, kind: input, shape index: {}]   ;;  %s1017_s3 = inlined_call_operand.hbm [shape: f32[2,1,10], index: 3, kind: output, shape index: {}]  }
   0x1   :  { %9 = vsyncpa [#allocation9], 0 }
   0x2   :  { %11 = vsyncpa [#allocation9 + $0x1], 0 }
   0x3   :  { %12 = vsyncpa [#allocation7], 0 }
   0x4   :  { %14 = vsyncpa [#allocation7 + $0x1], 0  ;;  %s749_s12 = smov 0   ;;  %s751_s13 = smov 0  }
   0x5   :  { %s753_s14 = smov 0   ;;  %s755_s15 = smov 0  }
   0x6   :  { %s757_s16 = smov 0   ;;  %s759_s17 = smov 0  }
   0x7 LB: > { %s32_s18 = sadd.s32 1, %s717_s16  ;;  %s62_s19 = sadd.s32 1, %s709_s14  ;;  %s721_s17 = sphi %s759_s17, %s20_s17   ;;  %s717_s16 = sphi %s757_s16, %s1043_s16   ;;  %s713_s15 = sphi %s755_s15, %s1042_s15   ;;  %s709_s14 = sphi %s753_s14, %s1041_s14   ;;  %s705_s13 = sphi %s751_s13, %s1040_s13   ;;  %s701_s12 = sphi %s749_s12, %s1039_s12  }
   0x8   : > { %p34_p0 = scmp.ge.s32.totalorder %s32_s18, 2  ;;  %p69_p1 = scmp.ne.s32.totalorder %s709_s14, %s705_s13 }
   0x9   : > { %p70_p2 = scmp.eq.s32.totalorder %s721_s17, 0  ;;  %p487_p5 = scmp.lt.s32.totalorder %s721_s17, 2 }
   0xa   : > { %s1045_s18 = smov (%p34_p0, %s32_s18), 0  ;;  %s164_s21 = sand.u32 1, %s721_s17  }
   0xb   : > { %p71_p4 = por %p70_p2, %p69_p1  ;;  %s57_s20 = ssub.s32 %s717_s16, %s1045_s18 }
   0xc   : > { %p60_p6 = scmp.eq.s32.totalorder %s57_s20, 0  ;;  %s166_s22 = sand.u32 1, %s709_s14  }
   0xd   : > { %s450_s23 = sshll.u32 %s717_s16, 7  ;;  %s799_s25 = sshll.u32 %s166_s22, 3 }
   0xe   : > { %s797_s24 = scalar_select %p60_p6, %s709_s14, %s62_s19  }
   0xf   : > { %s806_s28 = scalar_lea.hbm %s1015_s1, %s450_s23  ;;  %p808_p7 = pnand %p487_p5, %p71_p4 }
  0x10   : > { %s168_s30 = scalar_lea.vmem [#allocation8], %s799_s25  ;;  %s815_s5 = scalar_lea.sflag [#allocation9], %s164_s21 }
  0x11   : > { %s176_s4 = sshll.u32 %s168_s30, 4  ;;  %s547_s6 = scalar_lea.hbm %s806_s28, 128  ;;  %s813_s4 = int_to_ptr.vmem [resolvable:$true] %s176_s4 }
  0x12   : > { %p548_p8 = scmp.ne.s32.totalorder %s806_s28, %s547_s6  ;;  %p549_p9 = pneg %p808_p7 }
  0x13   : > { %s552_s9 = scalar_lea.hbm %s1015_s1, 256  ;;  %p553_p12 = scmp.lt.u32.totalorder %s806_s28, %s1015_s1 }
  0x14   : > { %p550_p10 = pnand %p549_p9, %p548_p8  ;;  %p554_p13 = scmp.lt.u32.totalorder %s552_s9, %s547_s6 }
  0x15   : > { %p556_p2 = scmp.lt.u32.totalorder %s547_s6, %s806_s28 }
  0x16   : > { %p551_p11 = pneg %p550_p10  ;;  %p555_p0 = por %p554_p13, %p553_p12 }
  0x18   : > { %p557_p4 = por %p556_p2, %p555_p0 }
  0x1a   : > { %p558_p5 = pnand %p557_p4, %p551_p11 }
  0x1c   : > { %561 = shalt.err (!%p558_p5)
}
  0x1d   : > { %s562_s19 = scalar_lea.vmem %s813_s4, 128  ;;  %s723_s20 = smov [#allocation8]  }
  0x1e   : > { %p563_p6 = scmp.ne.s32.totalorder %s813_s4, %s562_s19  ;;  %s567_s21 = sshll.u32 %s723_s20, 4  ;;  %s568_s21 = int_to_ptr.vmem [resolvable:$false] %s567_s21 }
  0x1f   : > { %s569_s22 = scalar_lea.vmem %s568_s21, 256  ;;  %p570_p3 = scmp.lt.s32.totalorder %s813_s4, %s568_s21 }
  0x20   : > { %p565_p8 = pnand %p563_p6, %p549_p9  ;;  %p571_p12 = scmp.lt.s32.totalorder %s569_s22, %s562_s19 }
  0x22   : > { %p566_p10 = pneg %p565_p8  ;;  %p572_p13 = por %p571_p12, %p570_p3 }
  0x24   : > { %p573_p0 = pnand %p572_p13, %p566_p10 }
  0x26   : > { %576 = shalt.err (!%p573_p0)
}
  0x27   : > { %478 = dma.hbm_to_vmem [thread:$0]  (!%p808_p7), %s806_s28, 128, %s813_s4, %s815_s5  }
  0x28   : > { %s844_s26 = sadd.s32 4294967295, %s721_s17   ;;  %s445_s27 = sadd.s32 4294967294, %s721_s17  }
  0x29   : > { %p75_p3 = scmp.ne.s32.totalorder %s705_s13, %s701_s12  ;;  %p1018_p11 = scmp.eq.s32.totalorder %s844_s26, 0 }
  0x2a   : > { %p127_p2 = scmp.eq.s32.totalorder %s844_s26, 1  ;;  %p133_p4 = scmp.eq.s32.totalorder %s445_s27, 1 }
  0x2b   : > { %p446_p5 = scmp.ge.s32.totalorder %s721_s17, 1  ;;  %p854_p6 = por %p1018_p11, %p75_p3 }
  0x2c   : > { %p861_p8 = por %p127_p2, %p69_p1  ;;  %p865_p10 = por %p133_p4, %p75_p3 }
  0x2d   : > { %s1024_s30 = scalar_select %p854_p6, 1, 0 }
  0x2e   : > { %s1025_s28 = scalar_select %p861_p8, 1, 0 }
  0x2f   : > { %s1026_s4 = scalar_select %p865_p10, 1, 0 }
  0x30   : > { %p140_p12 = scmp.lt.s32.totalorder %s721_s17, 3  ;;  %s875_s8 = scalar_lea.hbm %s1016_s2, %s450_s23 }
  0x31   : > { %s724_s10 = smov [#allocation5]   ;;  %s187_s19 = scalar_lea.vmem [#allocation10], %s799_s25 }
  0x32   : > { %p877_p13 = pnand %p446_p5, %p140_p12  ;;  %s881_s11 = sshll.u32 %s724_s10, 4  ;;  %s154_s11 = int_to_ptr.vmem [resolvable:$true] %s881_s11 }
  0x33   : > { %s195_s20 = sshll.u32 %s187_s19, 4  ;;  %s577_s21 = scalar_lea.hbm %s875_s8, 128  ;;  %s196_s20 = int_to_ptr.vmem [resolvable:$true] %s195_s20 }
  0x34   : > { %s1027_s9 = scalar_select %p877_p13, 1, 0 }
  0x35   : > { %p578_p0 = scmp.ne.s32.totalorder %s875_s8, %s577_s21  ;;  %s582_s27 = scalar_lea.hbm %s1016_s2, 256 }
  0x36   : > { %p583_p4 = scmp.lt.u32.totalorder %s875_s8, %s1016_s2  ;;  %p584_p5 = scmp.lt.u32.totalorder %s582_s27, %s577_s21 }
  0x37   : > { %p580_p3 = pnand %p578_p0, %p549_p9  ;;  %p586_p11 = scmp.lt.u32.totalorder %s577_s21, %s875_s8 }
  0x38   : > { %p585_p12 = por %p584_p5, %p583_p4 }
  0x39   : > { %p581_p2 = pneg %p580_p3 }
  0x3a   : > { %p587_p10 = por %p586_p11, %p585_p12 }
  0x3c   : > { %p588_p1 = pnand %p587_p10, %p581_p2 }
  0x3e   : > { %591 = shalt.err (!%p588_p1)
}
  0x3f   : > { %s592_s25 = scalar_lea.vmem %s196_s20, 128  ;;  %s725_s10 = smov [#allocation10]  }
  0x40   : > { %p593_p8 = scmp.ne.s32.totalorder %s196_s20, %s592_s25  ;;  %s597_s19 = sshll.u32 %s725_s10, 4  ;;  %s598_s19 = int_to_ptr.vmem [resolvable:$false] %s597_s19 }
  0x41   : > { %s599_s23 = scalar_lea.vmem %s598_s19, 256  ;;  %p600_p6 = scmp.lt.s32.totalorder %s196_s20, %s598_s19 }
  0x42   : > { %p595_p0 = pnand %p593_p8, %p549_p9  ;;  %p601_p13 = scmp.lt.s32.totalorder %s599_s23, %s592_s25 }
  0x44   : > { %p596_p3 = pneg %p595_p0  ;;  %p602_p4 = por %p601_p13, %p600_p6 }
  0x46   : > { %p603_p5 = pnand %p602_p4, %p596_p3 }
  0x48   : > { %606 = shalt.err (!%p603_p5)
}
  0x49   : > { %481 = dma.hbm_to_vmem [thread:$0]  (!%p808_p7), %s875_s8, 128, %s196_s20, %s815_s5  }
  0x4a   : > { %p1028_p9 = scmp.eq.s32.totalorder %s844_s26, 0  ;;  %p1029_p11 = scmp.ne.s32.totalorder %s1027_s9, 0 }
  0x4b   : > { %s607_s6 = scalar_lea.hbm %s1014_s0, 16 }
  0x4c   : > { %p1030_p8 = pneg %p1029_p11  ;;  %p608_p6 = scmp.ne.s32.totalorder %s1014_s0, %s607_s6 }
  0x4d   : > { %p614_p2 = scmp.lt.u32.totalorder %s607_s6, %s1014_s0 }
  0x4e   : > { %p912_p10 = pnand %p1030_p8, %p1028_p9 }
  0x50   : > { %p609_p13 = pneg %p912_p10 }
  0x52   : > { %p610_p7 = pnand %p609_p13, %p608_p6 }
  0x54   : > { %p611_p1 = pneg %p610_p7 }
  0x56   : > { %p616_p12 = pnand %p614_p2, %p611_p1 }
  0x58   : > { %619 = shalt.err (!%p616_p12)
}
  0x59   : > { %s620_s20 = scalar_lea.vmem %s154_s11, 16  ;;  %s627_s25 = scalar_lea.vmem %s154_s11, 32 }
  0x5a   : > { %p621_p0 = scmp.ne.s32.totalorder %s154_s11, %s620_s20  ;;  %p628_p5 = scmp.lt.s32.totalorder %s154_s11, %s154_s11 }
  0x5b   : > { %p629_p9 = scmp.lt.s32.totalorder %s627_s25, %s620_s20 }
  0x5c   : > { %p623_p3 = pnand %p621_p0, %p609_p13 }
  0x5d   : > { %p630_p8 = por %p629_p9, %p628_p5 }
  0x5e   : > { %p624_p4 = pneg %p623_p3 }
  0x60   : > { %p631_p11 = pnand %p630_p8, %p624_p4 }
  0x62   : > { %634 = shalt.err (!%p631_p11)
}
  0x63   : > { %474 = dma.hbm_to_vmem [thread:$0]  (!%p912_p10), %s1014_s0, 16, %s154_s11, [#allocation6]  }
  0x64   : > { %p1032_p6 = scmp.ne.s32.totalorder %s1027_s9, 0 }
  0x65   : > { %p1033_p7 = scmp.eq.s32.totalorder (!%p1032_p6), %s844_s26, 0 }
  0x66   : > { %204 = sbr.rel (%p1032_p6) target bundleno = 202 (0xca), region = 32 }
  0x6d   : > { %688 = dma.done.wait (%p1033_p7), [#allocation6], 16   ;;  %p1034_p13 = pmov %p1033_p7 }
  0x6e   : > { %s210_s23 = sand.u32 1, %s844_s26   ;;  %s940_s22 = sand.u32 1, %s705_s13  }
  0x6f   : > { %690 = vsyncadd (%p1034_p13), [#allocation6], 4294967280  ;;  %s455_s21 = sshll.u32 %s940_s22, 3  ;;  %s211_s27 = scalar_lea.sflag [#allocation9], %s210_s23 }
  0x70   : > { %s943_s6 = scalar_lea.vmem [#allocation8], %s455_s21  ;;  %p1035_p11 = scmp.ne.s32.totalorder %s1024_s30, 0 }
  0x72   : > { %692 = dma.done.wait (%p1035_p11), %s211_s27, 256  }
  0x73   : > { %694 = vsyncadd (%p1035_p11), %s211_s27, 4294967040  ;;  %vm254_vm0 = vcmask 73728   ;;  %v726_v0 = vmov -inf   ;;  %v727_v1 = vmov 0.0   ;;  %v457_v2 = vld [vmem:[#allocation5] ss:$0 sm:$0xff]  ;;  %v282_v8 = vlaneseq }
  0x74   : > { %255 = vst.msk [vmem:[#allocation2] sm:$0x1] %vm254_vm0, %v726_v0  ;;  %256 = vst.msk [vmem:[#allocation3] sm:$0x1] %vm254_vm0, %v727_v1  ;;  %s223_s26 = scalar_lea.vmem [#allocation10], %s455_s21  ;;  %vm268_vm1 = vcmask 80896  }
  0x75   : > { %257 = vst.msk [vmem:[#allocation4] sm:$0x1] %vm254_vm0, %v727_v1  ;;  %v260_v3 = vld [vmem:[%s223_s26] sm:$0xff]  ;;  %v283_v11 = vshrl.u32 %v282_v8, 7  ;;  %v259_v22 = vld [vmem:[%s943_s6] sm:$0xff]  ;;  %s249_s30 = scalar_lea.vmem [#allocation11], %s940_s22 }
  0x76   : > { %v267_v4 = vmul.f32 %v457_v2, %v260_v3  ;;  %s336_s9 = sshll.u32 %s249_s30, 4  ;;  %s458_s11 = sshll.u32 %s713_s15, 4  ;;  %s961_s9 = int_to_ptr.vmem [resolvable:$true] %s336_s9 }
  0x77   : > { %v284_v15 = vsub.s32 0, %v283_v11  ;;  %s966_s5 = scalar_lea.hbm %s1017_s3, %s458_s11  ;;  %s324_s8 = scalar_lea.sflag [#allocation7], %s940_s22 }
  0x78   : > { %v269_v5 = vsel %vm268_vm1, %v267_v4, -inf  ;;  %s635_s20 = scalar_lea.vmem %s961_s9, 16  ;;  %p1036_p1 = scmp.ne.s32.totalorder %s1025_s28, 0 }
  0x79   : > { %v270_v6 = vrot.slane %v269_v5, 4  ;;  %p636_p10 = scmp.ne.s32.totalorder %s961_s9, %s635_s20  ;;  %s728_s15 = smov [#allocation11]  }
  0x7a   : > { %s639_s25 = sshll.u32 %s728_s15, 4  ;;  %s640_s25 = int_to_ptr.vmem [resolvable:$false] %s639_s25 }
  0x7b   : > { %v271_v7 = vmax.f32 %v269_v5, %v270_v6  ;;  %v276_v13 = vld [vmem:[#allocation2] sm:$0x1]  ;;  %v290_v38 = vld [vmem:[#allocation3] sm:$0x1]  ;;  %p637_p2 = pnand %p636_p10, %p1036_p1  ;;  %s641_s10 = scalar_lea.vmem %s640_s25, 32 }
  0x7c   : > { %v303_v35 = vld [vmem:[#allocation4] sm:$0x1]  ;;  %p642_p0 = scmp.lt.s32.totalorder %s961_s9, %s640_s25  ;;  %p643_p3 = scmp.lt.s32.totalorder %s641_s10, %s635_s20 }
  0x7d   : > { %v272_v9 = vrot.slane %v271_v7, 2  ;;  %p638_p12 = pneg %p637_p2 }
  0x7e   : > { %p644_p4 = por %p643_p3, %p642_p0 }
  0x7f   : > { %v273_v10 = vmax.f32 %v271_v7, %v272_v9 }
  0x80   : > { %p645_p5 = pnand %p644_p4, %p638_p12 }
  0x81   : > { %v274_v12 = vrot.slane %v273_v10, 1 }
  0x83   : > { %v275_v14 = vmax.f32 %v273_v10, %v274_v12 }
  0x85   : > { %v277_v16 = vmax.f32 %v276_v13, %v275_v14 }
  0x87   : > { %v285_v17 = vrot.slane %v277_v16, %v284_v15  ;;  %314 = vst.msk [vmem:[#allocation2] sm:$0x1] %vm254_vm0, %v277_v16  ;;  %v278_v20 = vsub.f32 %v276_v13, %v277_v16 }
  0x89   : > { %v287_v18 = vsub.f32 %v267_v4, %v285_v17  ;;  %v279_v21 = vmul.f32 1.442695, %v278_v20 }
  0x8b   : > { %v288_v19 = vmul.f32 1.442695, %v287_v18 }
  0x8d   : > { %541 = vpow2.f32 %v288_v19 }
  0x8e   : > { %543 = vpow2.f32 %v279_v21 }
  0x97   : > { %v542_v23 = vpop.eup %541 }
  0x98   : > { %v305_v24 = vsel %vm268_vm1, %v542_v23, 0.0  ;;  %v292_v25 = vmul.f32 %v542_v23, %v259_v22  ;;  %v544_v34 = vpop.eup %543 }
  0x99   : > { %v306_v26 = vrot.slane %v305_v24, 4  ;;  %v304_v39 = vmul.f32 %v544_v34, %v303_v35  ;;  %v291_v43 = vmul.f32 %v544_v34, %v290_v38 }
  0x9a   : > { %v293_v27 = vsel %vm268_vm1, %v292_v25, 0.0 }
  0x9b   : > { %v307_v28 = vadd.f32 %v306_v26, %v305_v24  ;;  %v294_v29 = vrot.slane %v293_v27, 4 }
  0x9d   : > { %v308_v30 = vrot.slane %v307_v28, 2  ;;  %v295_v31 = vadd.f32 %v294_v29, %v293_v27 }
  0x9f   : > { %v309_v32 = vadd.f32 %v308_v30, %v307_v28  ;;  %v296_v33 = vrot.slane %v295_v31, 2 }
  0xa1   : > { %v310_v36 = vrot.slane %v309_v32, 1  ;;  %v297_v37 = vadd.f32 %v296_v33, %v295_v31 }
  0xa3   : > { %v311_v40 = vadd.f32 %v310_v36, %v309_v32  ;;  %v298_v41 = vrot.slane %v297_v37, 1 }
  0xa5   : > { %v312_v42 = vadd.f32 %v311_v40, %v304_v39  ;;  %v299_v44 = vadd.f32 %v298_v41, %v297_v37 }
  0xa7   : > { %313 = vst.msk [vmem:[#allocation4] sm:$0x1] %vm254_vm0, %v312_v42  ;;  %v300_v45 = vadd.f32 %v299_v44, %v291_v43 }
  0xa9   : > { %302 = vst.msk [vmem:[#allocation3] sm:$0x1] %vm254_vm0, %v300_v45 }
  0xae   : > { %v318_v46 = vld [vmem:[#allocation4] sm:$0x1] }
  0xaf   : > { %545 = vrcp.f32 %v318_v46 }
  0xb0   : > { %v320_v48 = vld [vmem:[#allocation3] sm:$0x1] }
  0xb9   : > { %v546_v47 = vpop.eup %545 }
  0xba   : > { %v321_v49 = vmul.f32 %v546_v47, %v320_v48 }
  0xbc   : > { %322 = vst.msk [vmem:[%s249_s30] sm:$0x1] %vm254_vm0, %v321_v49 }
  0xbd   : > { %648 = shalt.err (!%p645_p5)
}
  0xbe   : > { %s649_s19 = scalar_lea.hbm %s966_s5, 16  ;;  %s653_s21 = scalar_lea.hbm %s1017_s3, 32 }
  0xbf   : > { %p650_p9 = scmp.ne.s32.totalorder %s966_s5, %s649_s19  ;;  %p654_p7 = scmp.lt.u32.totalorder %s966_s5, %s1017_s3 }
  0xc0   : > { %p655_p13 = scmp.lt.u32.totalorder %s653_s21, %s649_s19  ;;  %p657_p10 = scmp.lt.u32.totalorder %s649_s19, %s966_s5 }
  0xc1   : > { %p651_p8 = pnand %p650_p9, %p1036_p1 }
  0xc2   : > { %p656_p11 = por %p655_p13, %p654_p7 }
  0xc3   : > { %p652_p6 = pneg %p651_p8 }
  0xc4   : > { %p658_p2 = por %p657_p10, %p656_p11 }
  0xc6   : > { %p659_p12 = pnand %p658_p2, %p652_p6 }
  0xc8   : > { %662 = shalt.err (!%p659_p12)
}
  0xc9   : > { %469 = dma.vmem_to_hbm [thread:$0]  (%p1036_p1), %s961_s9, 16, %s966_s5, %s324_s8  }
  0xca PF: > { %s348_s26 = sand.u32 1, %s701_s12   ;;  %p1037_p0 = scmp.ne.s32.totalorder %s1026_s4, 0 }
  0xcb   : > { %p1038_p3 = scmp.ge.s32.totalorder %s721_s17, 2  ;;  %s349_s30 = scalar_lea.sflag [#allocation7], %s348_s26 }
  0xcd   : > { %p483_p4 = pnand %p1038_p3, %p1037_p0 }
  0xcf   : > { %696 = dma.done.wait (!%p483_p4), %s349_s30, 16  }
  0xd0   : > { %698 = vsyncadd (!%p483_p4), %s349_s30, 4294967280  ;;  %s20_s17 = sadd.s32 1, %s721_s17   ;;  %s1039_s12 = smov %s705_s13 }
  0xd1   : > { %p17_p5 = scmp.ge.s32.totalorder %s20_s17, 4   ;;  %s1040_s13 = smov %s709_s14 }
  0xd2   : > { %s1041_s14 = smov %s797_s24  ;;  %s1042_s15 = smov %s717_s16 }
  0xd3   : > { %s1043_s16 = smov %s1045_s18  ;;  %19 = sbr.rel (!%p17_p5) target bundleno = 7 (0x7), region = 101 }
  0xda   :  { %353 = vsyncpa [#allocation6], 1 }
  0xdb   :  { %355 = vsyncpa [#allocation6 + $0x1], 1 }
  0xdc   :  { %356 = vsyncpa [#allocation9], 1 }
  0xdd   :  { %358 = vsyncpa [#allocation9 + $0x1], 1 }
  0xde   :  { %359 = vsyncpa [#allocation7], 1 }
  0xdf   :  { %361 = vsyncpa [#allocation7 + $0x1], 1 }

</bundles_post_ra>
